<compile_context>
chip_gen: v6e
topology: v6e:2x2x1
jax: 0.10.0
libtpu: 0.0.40
codegen_flags: <defaults>
</compile_context>

<pallas_src>
import jax
import jax.numpy as jnp
from jax.experimental import pallas as pl
from jax.experimental.pallas import tpu as pltpu


def deeponet_kernel(
    bx_ref, tx_ref,                 # batch tiles: branch (TB, BF), trunk (TB, TF)
    m_ref, v_ref,                   # collapsed branch/last-layer/W5: (BF, C), (BF, 1)
    w1_ref, b1_ref,                 # trunk layer 1 (TF, C), (1, C)
    w2_ref, b2_ref,                 # trunk layer 2 (C, C), (1, C)
    w3_ref, b3_ref,                 # trunk layer 3 (C, C), (1, C)
    w4_ref, b4_ref,                 # trunk layer 4 (C, C), (1, C)
    o_ref,                          # output tile (TB, 1)
):
    # Trunk net hidden stack: 4 x (Linear + Tanh) -> (TB, C)
    h = jnp.tanh(
        jnp.dot(tx_ref[...], w1_ref[...], preferred_element_type=jnp.float32)
        + b1_ref[...]
    )
    h = jnp.tanh(
        jnp.dot(h, w2_ref[...], preferred_element_type=jnp.float32) + b2_ref[...]
    )
    h = jnp.tanh(
        jnp.dot(h, w3_ref[...], preferred_element_type=jnp.float32) + b3_ref[...]
    )
    h = jnp.tanh(
        jnp.dot(h, w4_ref[...], preferred_element_type=jnp.float32) + b4_ref[...]
    )

    # Collapsed combine:
    #   sum_p branch*wl*trunk  ==  sum_j (bx@M)[:,j] * h[:,j]  +  bx@v
    bm = jnp.dot(bx_ref[...], m_ref[...], preferred_element_type=jnp.float32)    # (TB, C)
    bias = jnp.dot(bx_ref[...], v_ref[...], preferred_element_type=jnp.float32)  # (TB, 1)
    o_ref[...] = jnp.sum(bm * h, axis=1, keepdims=True) + bias


def deeponet_forward(branch_input, trunk_input, params, *, tile_b=4096):
    """Batch-tiled pallas_call wrapper.

    Inputs and the output are tiled over the batch ('parallel' grid axis); the
    post-collapse weights (a few KB) are VMEM-resident with a constant
    index_map.  tile_b=4096 amortizes per-grid-step overhead at large query
    counts while keeping double-buffered VMEM use ~1.2 MB on every generation
    (incl. the 64 MiB v7x).
    """
    B, BF = branch_input.shape
    TF = trunk_input.shape[1]
    C = params["W1"].shape[1]

    TB = min(tile_b, B)
    if TB != B:
        # Block second-last dim must be a multiple of 8 (or equal the full dim).
        TB = max(8, (TB // 8) * 8)
    grid = (pl.cdiv(B, TB),)

    row_map = lambda i: (i, 0)     # batch-tiled operands
    const_map = lambda i: (0, 0)   # VMEM-resident weights / biases

    in_specs = [
        pl.BlockSpec((TB, BF), row_map),   # branch_input tile
        pl.BlockSpec((TB, TF), row_map),   # trunk_input tile
        pl.BlockSpec((BF, C), const_map),  # M
        pl.BlockSpec((BF, 1), const_map),  # v
        pl.BlockSpec((TF, C), const_map),  # W1
        pl.BlockSpec((1, C), const_map),   # b1
        pl.BlockSpec((C, C), const_map),   # W2
        pl.BlockSpec((1, C), const_map),   # b2
        pl.BlockSpec((C, C), const_map),   # W3
        pl.BlockSpec((1, C), const_map),   # b3
        pl.BlockSpec((C, C), const_map),   # W4
        pl.BlockSpec((1, C), const_map),   # b4
    ]
    out_specs = pl.BlockSpec((TB, 1), row_map)

    return pl.pallas_call(
        deeponet_kernel,
        out_shape=jax.ShapeDtypeStruct((B, 1), jnp.float32),
        grid=grid,
        in_specs=in_specs,
        out_specs=out_specs,
        compiler_params=pltpu.CompilerParams(
            dimension_semantics=("parallel",),
        ),
    )(
        branch_input, trunk_input,
        params["M"], params["v"],
        params["W1"], params["b1"],
        params["W2"], params["b2"],
        params["W3"], params["b3"],
        params["W4"], params["b4"],
    )


def init_params(key, branch_features, trunk_features, common_features, p=1000):
    """Deterministic synthetic parameters (shapes match the PyTorch module).

    Linear weights are stored already transposed to (in, out).  Returns both
    the raw P=1000 parameters (for the reference forward) and the collapsed
    M / v used by the kernel.
    """
    ks = jax.random.split(key, 12)

    def lin(k, fan_in, fan_out):
        # uniform(-1/sqrt(fan_in), 1/sqrt(fan_in)), same scheme as nn.Linear
        bound = 1.0 / jnp.sqrt(jnp.float32(fan_in))
        kw, kb = jax.random.split(k)
        w = jax.random.uniform(kw, (fan_in, fan_out), jnp.float32, -bound, bound)
        b = jax.random.uniform(kb, (1, fan_out), jnp.float32, -bound, bound)
        return w, b

    Wb, _ = lin(ks[0], branch_features, p)                    # branch Linear, bias=False
    W1, b1 = lin(ks[1], trunk_features, common_features)
    W2, b2 = lin(ks[2], common_features, common_features)
    W3, b3 = lin(ks[3], common_features, common_features)
    W4, b4 = lin(ks[4], common_features, common_features)
    W5, b5 = lin(ks[5], common_features, p)
    w_last = jax.random.normal(ks[6], (1, p), jnp.float32)    # torch.randn(1000)

    # Exact algebraic collapse of the P=1000 latent dimension.
    A = Wb * w_last                      # (BF, P)
    M = A @ W5.T                         # (BF, C)
    v = A @ b5.T                         # (BF, 1)

    return {
        # collapsed params used by the kernel
        "M": M, "v": v,
        "W1": W1, "b1": b1,
        "W2": W2, "b2": b2,
        "W3": W3, "b3": b3,
        "W4": W4, "b4": b4,
        # raw params kept for the un-collapsed reference
        "Wb": Wb, "W5": W5, "b5": b5, "w_last": w_last,
    }


def reference_forward(branch_input, trunk_input, params):
    """Pure-JAX reference mirroring the PyTorch forward (no collapse)."""
    branch = branch_input @ params["Wb"]
    h = jnp.tanh(trunk_input @ params["W1"] + params["b1"])
    h = jnp.tanh(h @ params["W2"] + params["b2"])
    h = jnp.tanh(h @ params["W3"] + params["b3"])
    h = jnp.tanh(h @ params["W4"] + params["b4"])
    trunk = h @ params["W5"] + params["b5"]
    return jnp.sum(branch * trunk * params["w_last"], axis=1, keepdims=True)


if __name__ == "__main__":
    # Small, DeepONet-consistent shapes:
    #   branch_input: (batch, branch_features)  — sampled source function
    #   trunk_input : (batch, trunk_features)   — 2D query coordinates (x, y)
    batch = 64
    branch_features = 32
    trunk_features = 2
    common_features = 32

    key = jax.random.PRNGKey(0)
    k_params, k_branch, k_trunk = jax.random.split(key, 3)

    params = init_params(k_params, branch_features, trunk_features, common_features)
    branch_input = jax.random.normal(k_branch, (batch, branch_features), jnp.float32)
    trunk_input = jax.random.normal(k_trunk, (batch, trunk_features), jnp.float32)

    # tile_b=32 here just to exercise the multi-step batch grid (2 steps);
    # production callers keep the larger default.
    out = deeponet_forward(branch_input, trunk_input, params, tile_b=32)
    out = jax.block_until_ready(out)

    ref = jax.block_until_ready(reference_forward(branch_input, trunk_input, params))
    assert out.shape == (batch, 1)
    assert jnp.allclose(out, ref, rtol=1e-4, atol=1e-4)

    print("KERNEL_OK")
</pallas_src>

<mosaic_0001>
module attributes {stable_mosaic.version = 11 : i64} {
  func.func @deeponet_kernel(%arg0: i32, %arg1: memref<32x32xf32, #tpu.memory_space<vmem>>, %arg2: memref<32x2xf32, #tpu.memory_space<vmem>>, %arg3: memref<32x32xf32, #tpu.memory_space<vmem>>, %arg4: memref<32x1xf32, #tpu.memory_space<vmem>>, %arg5: memref<2x32xf32, #tpu.memory_space<vmem>>, %arg6: memref<1x32xf32, #tpu.memory_space<vmem>>, %arg7: memref<32x32xf32, #tpu.memory_space<vmem>>, %arg8: memref<1x32xf32, #tpu.memory_space<vmem>>, %arg9: memref<32x32xf32, #tpu.memory_space<vmem>>, %arg10: memref<1x32xf32, #tpu.memory_space<vmem>>, %arg11: memref<32x32xf32, #tpu.memory_space<vmem>>, %arg12: memref<1x32xf32, #tpu.memory_space<vmem>>, %arg13: memref<32x1xf32, #tpu.memory_space<vmem>>) attributes {dimension_semantics = [#tpu.dimension_semantics<parallel>], iteration_bounds = array<i64: 2>, scalar_prefetch = 0 : i64, scratch_operands = 0 : i64, tpu.core_type = #tpu.core_type<tc>, window_params = [{transform_indices = @transform_0, window_bounds = array<i64: 32, 32>}, {transform_indices = @transform_1, window_bounds = array<i64: 32, 2>}, {pipeline_mode = #tpu.pipeline_mode<synchronous>, transform_indices = @transform_2, window_bounds = array<i64: 32, 32>}, {pipeline_mode = #tpu.pipeline_mode<synchronous>, transform_indices = @transform_3, window_bounds = array<i64: 32, 1>}, {pipeline_mode = #tpu.pipeline_mode<synchronous>, transform_indices = @transform_4, window_bounds = array<i64: 2, 32>}, {pipeline_mode = #tpu.pipeline_mode<synchronous>, transform_indices = @transform_5, window_bounds = array<i64: 1, 32>}, {pipeline_mode = #tpu.pipeline_mode<synchronous>, transform_indices = @transform_6, window_bounds = array<i64: 32, 32>}, {pipeline_mode = #tpu.pipeline_mode<synchronous>, transform_indices = @transform_7, window_bounds = array<i64: 1, 32>}, {pipeline_mode = #tpu.pipeline_mode<synchronous>, transform_indices = @transform_8, window_bounds = array<i64: 32, 32>}, {pipeline_mode = #tpu.pipeline_mode<synchronous>, transform_indices = @transform_9, window_bounds = array<i64: 1, 32>}, {pipeline_mode = #tpu.pipeline_mode<synchronous>, transform_indices = @transform_10, window_bounds = array<i64: 32, 32>}, {pipeline_mode = #tpu.pipeline_mode<synchronous>, transform_indices = @transform_11, window_bounds = array<i64: 1, 32>}, {transform_indices = @transform_12, window_bounds = array<i64: 32, 1>}]} {
    %c0 = arith.constant 0 : index
    %c0_0 = arith.constant 0 : index
    %0 = vector.load %arg2[%c0, %c0_0] : memref<32x2xf32, #tpu.memory_space<vmem>>, vector<32x2xf32>
    %c0_1 = arith.constant 0 : index
    %c0_2 = arith.constant 0 : index
    %1 = vector.load %arg5[%c0_1, %c0_2] : memref<2x32xf32, #tpu.memory_space<vmem>>, vector<2x32xf32>
    %cst = arith.constant dense<0.000000e+00> : vector<32x32xf32>
    %2 = tpu.matmul %0, %1, %cst {dimension_numbers = #tpu.dot_dimension_numbers<[1], [0], [0], [1], [0, 0, 1, 1], [], []>} : vector<32x2xf32>, vector<2x32xf32>, vector<32x32xf32> -> vector<32x32xf32>
    %c0_3 = arith.constant 0 : index
    %c0_4 = arith.constant 0 : index
    %3 = vector.load %arg6[%c0_3, %c0_4] : memref<1x32xf32, #tpu.memory_space<vmem>>, vector<1x32xf32>
    %4 = vector.broadcast %3 : vector<1x32xf32> to vector<32x32xf32>
    %5 = arith.addf %2, %4 : vector<32x32xf32>
    %6 = math.tanh %5 : vector<32x32xf32>
    %c0_5 = arith.constant 0 : index
    %c0_6 = arith.constant 0 : index
    %7 = vector.load %arg7[%c0_5, %c0_6] : memref<32x32xf32, #tpu.memory_space<vmem>>, vector<32x32xf32>
    %cst_7 = arith.constant dense<0.000000e+00> : vector<32x32xf32>
    %8 = tpu.matmul %6, %7, %cst_7 {dimension_numbers = #tpu.dot_dimension_numbers<[1], [0], [0], [1], [0, 0, 1, 1], [], []>} : vector<32x32xf32>, vector<32x32xf32>, vector<32x32xf32> -> vector<32x32xf32>
    %c0_8 = arith.constant 0 : index
    %c0_9 = arith.constant 0 : index
    %9 = vector.load %arg8[%c0_8, %c0_9] : memref<1x32xf32, #tpu.memory_space<vmem>>, vector<1x32xf32>
    %10 = vector.broadcast %9 : vector<1x32xf32> to vector<32x32xf32>
    %11 = arith.addf %8, %10 : vector<32x32xf32>
    %12 = math.tanh %11 : vector<32x32xf32>
    %c0_10 = arith.constant 0 : index
    %c0_11 = arith.constant 0 : index
    %13 = vector.load %arg9[%c0_10, %c0_11] : memref<32x32xf32, #tpu.memory_space<vmem>>, vector<32x32xf32>
    %cst_12 = arith.constant dense<0.000000e+00> : vector<32x32xf32>
    %14 = tpu.matmul %12, %13, %cst_12 {dimension_numbers = #tpu.dot_dimension_numbers<[1], [0], [0], [1], [0, 0, 1, 1], [], []>} : vector<32x32xf32>, vector<32x32xf32>, vector<32x32xf32> -> vector<32x32xf32>
    %c0_13 = arith.constant 0 : index
    %c0_14 = arith.constant 0 : index
    %15 = vector.load %arg10[%c0_13, %c0_14] : memref<1x32xf32, #tpu.memory_space<vmem>>, vector<1x32xf32>
    %16 = vector.broadcast %15 : vector<1x32xf32> to vector<32x32xf32>
    %17 = arith.addf %14, %16 : vector<32x32xf32>
    %18 = math.tanh %17 : vector<32x32xf32>
    %c0_15 = arith.constant 0 : index
    %c0_16 = arith.constant 0 : index
    %19 = vector.load %arg11[%c0_15, %c0_16] : memref<32x32xf32, #tpu.memory_space<vmem>>, vector<32x32xf32>
    %cst_17 = arith.constant dense<0.000000e+00> : vector<32x32xf32>
    %20 = tpu.matmul %18, %19, %cst_17 {dimension_numbers = #tpu.dot_dimension_numbers<[1], [0], [0], [1], [0, 0, 1, 1], [], []>} : vector<32x32xf32>, vector<32x32xf32>, vector<32x32xf32> -> vector<32x32xf32>
    %c0_18 = arith.constant 0 : index
    %c0_19 = arith.constant 0 : index
    %21 = vector.load %arg12[%c0_18, %c0_19] : memref<1x32xf32, #tpu.memory_space<vmem>>, vector<1x32xf32>
    %22 = vector.broadcast %21 : vector<1x32xf32> to vector<32x32xf32>
    %23 = arith.addf %20, %22 : vector<32x32xf32>
    %24 = math.tanh %23 : vector<32x32xf32>
    %c0_20 = arith.constant 0 : index
    %c0_21 = arith.constant 0 : index
    %25 = vector.load %arg1[%c0_20, %c0_21] : memref<32x32xf32, #tpu.memory_space<vmem>>, vector<32x32xf32>
    %c0_22 = arith.constant 0 : index
    %c0_23 = arith.constant 0 : index
    %26 = vector.load %arg3[%c0_22, %c0_23] : memref<32x32xf32, #tpu.memory_space<vmem>>, vector<32x32xf32>
    %cst_24 = arith.constant dense<0.000000e+00> : vector<32x32xf32>
    %27 = tpu.matmul %25, %26, %cst_24 {dimension_numbers = #tpu.dot_dimension_numbers<[1], [0], [0], [1], [0, 0, 1, 1], [], []>} : vector<32x32xf32>, vector<32x32xf32>, vector<32x32xf32> -> vector<32x32xf32>
    %c0_25 = arith.constant 0 : index
    %c0_26 = arith.constant 0 : index
    %28 = vector.load %arg1[%c0_25, %c0_26] : memref<32x32xf32, #tpu.memory_space<vmem>>, vector<32x32xf32>
    %c0_27 = arith.constant 0 : index
    %c0_28 = arith.constant 0 : index
    %29 = vector.load %arg4[%c0_27, %c0_28] : memref<32x1xf32, #tpu.memory_space<vmem>>, vector<32x1xf32>
    %cst_29 = arith.constant dense<0.000000e+00> : vector<32x1xf32>
    %30 = tpu.matmul %28, %29, %cst_29 {dimension_numbers = #tpu.dot_dimension_numbers<[1], [0], [0], [1], [0, 0, 1, 1], [], []>} : vector<32x32xf32>, vector<32x1xf32>, vector<32x1xf32> -> vector<32x1xf32>
    %31 = arith.mulf %27, %24 : vector<32x32xf32>
    %cst_30 = arith.constant dense<0.000000e+00> : vector<32xf32>
    %32 = vector.multi_reduction <add>, %31, %cst_30 [1] : vector<32x32xf32> to vector<32xf32>
    %33 = vector.shape_cast %32 : vector<32xf32> to vector<32x1xf32>
    %34 = arith.addf %33, %30 : vector<32x1xf32>
    %c0_31 = arith.constant 0 : index
    %c0_32 = arith.constant 0 : index
    %35 = vector.load %arg13[%c0_31, %c0_32] : memref<32x1xf32, #tpu.memory_space<vmem>>, vector<32x1xf32>
    tpu.vector_store %arg13[%c0_31, %c0_32], %34 {strides = array<i32>} : memref<32x1xf32, #tpu.memory_space<vmem>>, vector<32x1xf32>,
    return
  }
  func.func @transform_0(%arg0: i32) -> (i32, i32) {
    %c0_i32 = arith.constant 0 : i32
    %c0_i32_0 = arith.constant 0 : i32
    return %arg0, %c0_i32 : i32, i32
  }
  func.func @transform_1(%arg0: i32) -> (i32, i32) {
    %c0_i32 = arith.constant 0 : i32
    %c0_i32_0 = arith.constant 0 : i32
    return %arg0, %c0_i32 : i32, i32
  }
  func.func @transform_2(%arg0: i32) -> (i32, i32) {
    %c0_i32 = arith.constant 0 : i32
    %c0_i32_0 = arith.constant 0 : i32
    %c0_i32_1 = arith.constant 0 : i32
    return %c0_i32, %c0_i32_0 : i32, i32
  }
  func.func @transform_3(%arg0: i32) -> (i32, i32) {
    %c0_i32 = arith.constant 0 : i32
    %c0_i32_0 = arith.constant 0 : i32
    %c0_i32_1 = arith.constant 0 : i32
    return %c0_i32, %c0_i32_0 : i32, i32
  }
  func.func @transform_4(%arg0: i32) -> (i32, i32) {
    %c0_i32 = arith.constant 0 : i32
    %c0_i32_0 = arith.constant 0 : i32
    %c0_i32_1 = arith.constant 0 : i32
    return %c0_i32, %c0_i32_0 : i32, i32
  }
  func.func @transform_5(%arg0: i32) -> (i32, i32) {
    %c0_i32 = arith.constant 0 : i32
    %c0_i32_0 = arith.constant 0 : i32
    %c0_i32_1 = arith.constant 0 : i32
    return %c0_i32, %c0_i32_0 : i32, i32
  }
  func.func @transform_6(%arg0: i32) -> (i32, i32) {
    %c0_i32 = arith.constant 0 : i32
    %c0_i32_0 = arith.constant 0 : i32
    %c0_i32_1 = arith.constant 0 : i32
    return %c0_i32, %c0_i32_0 : i32, i32
  }
  func.func @transform_7(%arg0: i32) -> (i32, i32) {
    %c0_i32 = arith.constant 0 : i32
    %c0_i32_0 = arith.constant 0 : i32
    %c0_i32_1 = arith.constant 0 : i32
    return %c0_i32, %c0_i32_0 : i32, i32
  }
  func.func @transform_8(%arg0: i32) -> (i32, i32) {
    %c0_i32 = arith.constant 0 : i32
    %c0_i32_0 = arith.constant 0 : i32
    %c0_i32_1 = arith.constant 0 : i32
    return %c0_i32, %c0_i32_0 : i32, i32
  }
  func.func @transform_9(%arg0: i32) -> (i32, i32) {
    %c0_i32 = arith.constant 0 : i32
    %c0_i32_0 = arith.constant 0 : i32
    %c0_i32_1 = arith.constant 0 : i32
    return %c0_i32, %c0_i32_0 : i32, i32
  }
  func.func @transform_10(%arg0: i32) -> (i32, i32) {
    %c0_i32 = arith.constant 0 : i32
    %c0_i32_0 = arith.constant 0 : i32
    %c0_i32_1 = arith.constant 0 : i32
    return %c0_i32, %c0_i32_0 : i32, i32
  }
  func.func @transform_11(%arg0: i32) -> (i32, i32) {
    %c0_i32 = arith.constant 0 : i32
    %c0_i32_0 = arith.constant 0 : i32
    %c0_i32_1 = arith.constant 0 : i32
    return %c0_i32, %c0_i32_0 : i32, i32
  }
  func.func @transform_12(%arg0: i32) -> (i32, i32) {
    %c0_i32 = arith.constant 0 : i32
    %c0_i32_0 = arith.constant 0 : i32
    return %arg0, %c0_i32 : i32, i32
  }
}

</mosaic_0001>

<bundles_post_ra>
// kernel: tpu_custom_call.1
= control target key start
LH: loop header
LB: loop body
LE: loop exit
PB: predicated region body
PF: predicated region fallthrough
CT: control target
= control target key end

     0   :  { %s1467_s21 = smov 0   ;;  %s1591_s0 = inlined_call_operand.vmem [shape: f32[64,32], index: 0, kind: input, shape index: {}]   ;;  %s1592_s1 = inlined_call_operand.vmem [shape: f32[64,2], index: 1, kind: input, shape index: {}]   ;;  %s1593_s2 = inlined_call_operand.vmem [shape: f32[32,32], index: 2, kind: input, shape index: {}]   ;;  %s1594_s3 = inlined_call_operand.vmem [shape: f32[32,1], index: 3, kind: input, shape index: {}]   ;;  %s1595_s4 = inlined_call_operand.vmem [shape: f32[2,32], index: 4, kind: input, shape index: {}]   ;;  %s1596_s5 = inlined_call_operand.vmem [shape: f32[1,32], index: 5, kind: input, shape index: {}]   ;;  %s1597_s6 = inlined_call_operand.vmem [shape: f32[32,32], index: 6, kind: input, shape index: {}]   ;;  %s1598_s7 = inlined_call_operand.vmem [shape: f32[1,32], index: 7, kind: input, shape index: {}]   ;;  %s1599_s8 = inlined_call_operand.vmem [shape: f32[32,32], index: 8, kind: input, shape index: {}]   ;;  %s1600_s9 = inlined_call_operand.vmem [shape: f32[1,32], index: 9, kind: input, shape index: {}]   ;;  %s1601_s10 = inlined_call_operand.vmem [shape: f32[32,32], index: 10, kind: input, shape index: {}]   ;;  %s1602_s11 = inlined_call_operand.vmem [shape: f32[1,32], index: 11, kind: input, shape index: {}]   ;;  %s1603_s12 = inlined_call_operand.vmem [shape: f32[64,1], index: 12, kind: output, shape index: {}]  }
   0x1 LB: > { %s1181_s22 = sadd.s32 4294967295, %s1400_s21   ;;  %p1185_p0 = scmp.ge.s32.totalorder %s1400_s21, 1  ;;  %s1400_s21 = sphi %s1467_s21, %s22_s21  }
   0x2   : > { %p374_p1 = scmp.lt.s32.totalorder %s1400_s21, 3 }
   0x4   : > { %p375_p2 = pnand %p1185_p0, %p374_p1 }
   0x5   : > { %s1186_s25 = sshll.u32 (!%p375_p2), %s1181_s22, 2 }
   0x6   : > { %378 = sbr.rel (%p375_p2) target bundleno = 1015 (0x3f7), region = 68  ;;  %p422_p3 = scmp.lt.s32.totalorder (!%p375_p2), %s1186_s25, 7 }
   0xb   : > { %v443_v0 = vld [vmem:[%s1595_s4] sm:$0x3]  ;;  %vm464_vm0 = vcmask 1041408   ;;  %s1605_s25 = smov (!%p422_p3, %s1186_s25), 7  ;;  %vm451_vm1 = vcmask 15360   ;;  %v560_v5 = vld [vmem:[%s1597_s6 + $0x18] sm:$0xff] }
   0xc   : > { %1268 = vmatprep.subr.msk.mxu0 %vm464_vm0, %v443_v0  ;;  %s1478_s26 = sshll.u32 %s1605_s25, 3  ;;  %v559_v6 = vld [vmem:[%s1597_s6 + $0x10] sm:$0xff]  ;;  %1276 = vmatprep.subr.mxu1 %v560_v5  ;;  %v558_v7 = vld [vmem:[%s1597_s6 + $0x8] sm:$0xff]  ;;  %v557_v8 = vld [vmem:[%s1597_s6] sm:$0xff]  ;;  %vm568_vm2 = vcmask 261120   ;;  %vm1108_vm3 = vcmask 7168  }
   0xd   : > { %1269 = vmatpush3.msk.msra.mxu0 %vm464_vm0, %v443_v0  ;;  %s431_s29 = scalar_lea.vmem %s1592_s1, %s1478_s26  ;;  %1277 = vmatpush3.msra.mxu1 %v560_v5  ;;  %v1192_v9 = vld [vmem:[%s1596_s5] ss:$0 sm:$0xff]  ;;  %v673_v22 = vld [vmem:[%s1599_s8 + $0x18] sm:$0xff]  ;;  %v672_v23 = vld [vmem:[%s1599_s8 + $0x10] sm:$0xff]  ;;  %s425_s14 = scalar_lea.vmem %s1591_s0, %s1478_s26 }
   0xe   : > { %v439_v1 = vld [vmem:[%s431_s29] sm:$0xff]  ;;  %v440_v2 = vld [vmem:[%s431_s29 + $0x8] sm:$0xff]  ;;  %v441_v3 = vld [vmem:[%s431_s29 + $0x10] sm:$0xff]  ;;  %1278 = vmatprep.subr.mxu1 %v559_v6  ;;  %1290 = vmatprep.subr.mxu0 %v673_v22  ;;  %s437_s17 = scalar_lea.vmem %s1603_s12, %s1478_s26 }
   0xf   : > { %1270 = vmatprep.mubr.msk.f32.mxu0 %vm451_vm1, %v439_v1  ;;  %v442_v4 = vld [vmem:[%s431_s29 + $0x18] sm:$0xff]  ;;  %1279 = vmatpush3.msra.mxu1 %v559_v6  ;;  %v671_v24 = vld [vmem:[%s1599_s8 + $0x8] sm:$0xff]  ;;  %v670_v25 = vld [vmem:[%s1599_s8] sm:$0xff] }
  0x10   : > { %1271 = vmatmul.mubr.msk.f32.vlgmr.msra.gmra.mxu0 %vm451_vm1, %v440_v2  ;;  %1280 = vmatprep.subr.mxu1 %v558_v7  ;;  %v1198_v26 = vld [vmem:[%s1598_s7] ss:$0 sm:$0xff]  ;;  %v785_v39 = vld [vmem:[%s1601_s10 + $0x18] sm:$0xff]  ;;  %v784_v40 = vld [vmem:[%s1601_s10 + $0x10] sm:$0xff] }
  0x11   : > { %1273 = vmatprep.mubr.msk.f32.mxu0 %vm451_vm1, %v441_v3  ;;  %1281 = vmatpush3.msra.mxu1 %v558_v7  ;;  %v783_v41 = vld [vmem:[%s1601_s10 + $0x8] sm:$0xff]  ;;  %v782_v42 = vld [vmem:[%s1601_s10] sm:$0xff]  ;;  %v901_v43 = vld [vmem:[%s1593_s2 + $0x18] sm:$0xff] }
  0x12   : > { %1282 = vmatprep.subr.mxu1 %v557_v8  ;;  %1291 = vmatpush3.msra.mxu0 %v673_v22  ;;  %v900_v44 = vld [vmem:[%s1593_s2 + $0x10] sm:$0xff]  ;;  %v894_v45 = vld [vmem:[%s425_s14] sm:$0xff]  ;;  %v899_v46 = vld [vmem:[%s1593_s2 + $0x8] sm:$0xff] }
  0x13   : > { %1283 = vmatpush3.msra.mxu1 %v557_v8  ;;  %1292 = vmatprep.subr.mxu0 %v672_v23  ;;  %v1002_v47 = vld [vmem:[%s1594_s3 + $0x18] sm:$0xff]  ;;  %v898_v48 = vld [vmem:[%s1593_s2] sm:$0xff]  ;;  %v895_v49 = vld [vmem:[%s425_s14 + $0x8] sm:$0xff] }
  0x14   : > { %1274 = vmatmul.mubr.msk.f32.gmra.mxu0 %vm451_vm1, %v442_v4  ;;  %1304 = vmatprep.subr.mxu1 %v785_v39  ;;  %v896_v50 = vld [vmem:[%s425_s14 + $0x10] sm:$0xff]  ;;  %v897_v52 = vld [vmem:[%s425_s14 + $0x18] sm:$0xff]  ;;  %v1000_v53 = vld [vmem:[%s1594_s3 + $0x8] sm:$0xff] }
  0x15   : > { %1293 = vmatpush3.msra.mxu0 %v672_v23  ;;  %v1001_v51 = vld [vmem:[%s1594_s3 + $0x10] sm:$0xff]  ;;  %v999_v54 = vld [vmem:[%s1594_s3] sm:$0xff] }
  0x16   : > { %1294 = vmatprep.subr.mxu0 %v671_v24  ;;  %v1203_v55 = vld [vmem:[%s1600_s9] ss:$0 sm:$0xff] }
  0x17   : > { %1295 = vmatpush3.msra.mxu0 %v671_v24  ;;  %v1208_v4 = vld [vmem:[%s1602_s11] ss:$0 sm:$0xff] }
  0x18   : > { %1296 = vmatprep.subr.mxu0 %v670_v25 }
  0x19   : > { %1297 = vmatpush3.msra.mxu0 %v670_v25 }
  0x1a   : > { %1318 = vmatprep.subr.mxu0 %v901_v43 }
  0xd0   : > { %v1272_v10 = vpop.f32.mrf.mxu0 }
  0xd1   : > { %v540_v11 = vadd.f32 %v1272_v10, %v1192_v9 }
  0xd2   : > { %v534_v12 = vpop.f32.mrf.mxu0 }
  0xd3   : > { %v535_v13 = vadd.f32 %v1192_v9, %v534_v12 }
  0xd4   : > { %v1275_v14 = vpop.f32.mrf.mxu0 }
  0xd5   : > { %1362 = vtanh.f32 %v535_v13  ;;  %v550_v15 = vadd.f32 %v1275_v14, %v1192_v9 }
  0xd6   : > { %1364 = vtanh.f32 %v540_v11  ;;  %v544_v16 = vpop.f32.mrf.mxu0 }
  0xd7   : > { %v545_v17 = vadd.f32 %v1192_v9, %v544_v16 }
  0xd9   : > { %1366 = vtanh.f32 %v545_v17 }
  0xda   : > { %1368 = vtanh.f32 %v550_v15 }
  0xe2   : > { %v1363_v18 = vpop.eup %1362 }
  0xe3   : > { %v1365_v19 = vpop.eup %1364  ;;  %1284 = vmatprep.mubr.msk.f32.mxu1 %vm568_vm2, %v1363_v18 }
  0xe4   : > { %1285 = vmatmul.mubr.msk.f32.vlgmr.msra.gmra.mxu1 %vm568_vm2, %v1365_v19 }
  0xe5   : > { %1305 = vmatpush3.msra.mxu1 %v785_v39 }
  0xe6   : > { %v1367_v20 = vpop.eup %1366  ;;  %1306 = vmatprep.subr.mxu1 %v784_v40 }
  0xe7   : > { %v1369_v21 = vpop.eup %1368  ;;  %1287 = vmatprep.mubr.msk.f32.mxu1 %vm568_vm2, %v1367_v20  ;;  %1307 = vmatpush3.msra.mxu1 %v784_v40 }
  0xe8   : > { %1288 = vmatmul.mubr.msk.f32.gmra.mxu1 %vm568_vm2, %v1369_v21  ;;  %1308 = vmatprep.subr.mxu1 %v783_v41 }
  0xe9   : > { %1309 = vmatpush3.msra.mxu1 %v783_v41 }
  0xea   : > { %1310 = vmatprep.subr.mxu1 %v782_v42 }
  0xeb   : > { %1311 = vmatpush3.msra.mxu1 %v782_v42 }
  0xec   : > { %1346 = vmatprep.subr.mxu1 %v1002_v47 }
 0x1a4   : > { %v1286_v27 = vpop.f32.mrf.mxu1 }
 0x1a5   : > { %v653_v28 = vadd.f32 %v1286_v27, %v1198_v26 }
 0x1a6   : > { %v647_v29 = vpop.f32.mrf.mxu1 }
 0x1a7   : > { %v648_v30 = vadd.f32 %v1198_v26, %v647_v29 }
 0x1a8   : > { %v1289_v31 = vpop.f32.mrf.mxu1 }
 0x1a9   : > { %1370 = vtanh.f32 %v648_v30  ;;  %v663_v32 = vadd.f32 %v1289_v31, %v1198_v26 }
 0x1aa   : > { %1372 = vtanh.f32 %v653_v28  ;;  %v657_v33 = vpop.f32.mrf.mxu1 }
 0x1ab   : > { %v658_v34 = vadd.f32 %v1198_v26, %v657_v33 }
 0x1ad   : > { %1374 = vtanh.f32 %v658_v34 }
 0x1ae   : > { %1376 = vtanh.f32 %v663_v32 }
 0x1b6   : > { %v1371_v35 = vpop.eup %1370 }
 0x1b7   : > { %v1373_v36 = vpop.eup %1372  ;;  %1298 = vmatprep.mubr.msk.f32.mxu0 %vm568_vm2, %v1371_v35 }
 0x1b8   : > { %1299 = vmatmul.mubr.msk.f32.vlgmr.msra.gmra.mxu0 %vm568_vm2, %v1373_v36 }
 0x1b9   : > { %1319 = vmatpush3.msra.mxu0 %v901_v43 }
 0x1ba   : > { %v1375_v37 = vpop.eup %1374  ;;  %1320 = vmatprep.subr.mxu0 %v900_v44 }
 0x1bb   : > { %v1377_v38 = vpop.eup %1376  ;;  %1301 = vmatprep.mubr.msk.f32.mxu0 %vm568_vm2, %v1375_v37  ;;  %1321 = vmatpush3.msra.mxu0 %v900_v44 }
 0x1bc   : > { %1302 = vmatmul.mubr.msk.f32.gmra.mxu0 %vm568_vm2, %v1377_v38  ;;  %1322 = vmatprep.subr.mxu0 %v899_v46 }
 0x1bd   : > { %1326 = vmatprep.mubr.msk.f32.mxu0 %vm568_vm2, %v894_v45  ;;  %1323 = vmatpush3.msra.mxu0 %v899_v46 }
 0x1be   : > { %1324 = vmatprep.subr.mxu0 %v898_v48 }
 0x1bf   : > { %1325 = vmatpush3.msra.mxu0 %v898_v48 }
 0x1c0   : > { %1327 = vmatmul.mubr.msk.f32.vlgmr.msra.gmra.mxu0 %vm568_vm2, %v895_v49  ;;  %1332 = vmatprep.subr.mxu0 %v1002_v47 }
 0x1c1   : > { %1329 = vmatprep.mubr.msk.f32.mxu0 %vm568_vm2, %v896_v50  ;;  %1333 = vmatpush3.msra.mxu0 %v1002_v47 }
 0x1c2   : > { %1334 = vmatprep.subr.mxu0 %v1001_v51 }
 0x1c3   : > { %1335 = vmatpush3.msra.mxu0 %v1001_v51 }
 0x1c4   : > { %1330 = vmatmul.mubr.msk.f32.gmra.mxu0 %vm568_vm2, %v897_v52  ;;  %1336 = vmatprep.subr.mxu0 %v1000_v53 }
 0x1c5   : > { %1337 = vmatpush3.msra.mxu0 %v1000_v53  ;;  %1340 = vmatprep.mubr.msk.f32.mxu0 %vm568_vm2, %v894_v45 }
 0x1c6   : > { %1338 = vmatprep.subr.mxu0 %v999_v54 }
 0x1c7   : > { %1339 = vmatpush3.msra.mxu0 %v999_v54 }
 0x1c8   : > { %1341 = vmatmul.mubr.msk.f32.vlgmr.msra.gmra.mxu0 %vm568_vm2, %v895_v49 }
 0x278   : > { %v1300_v56 = vpop.f32.mrf.mxu0 }
 0x279   : > { %v765_v57 = vadd.f32 %v1300_v56, %v1203_v55 }
 0x27a   : > { %v759_v58 = vpop.f32.mrf.mxu0 }
 0x27b   : > { %v760_v59 = vadd.f32 %v1203_v55, %v759_v58 }
 0x27c   : > { %v1303_v60 = vpop.f32.mrf.mxu0 }
 0x27d   : > { %1378 = vtanh.f32 %v760_v59  ;;  %v775_v61 = vadd.f32 %v1303_v60, %v1203_v55 }
 0x27e   : > { %1380 = vtanh.f32 %v765_v57  ;;  %v769_v62 = vpop.f32.mrf.mxu0 }
 0x27f   : > { %v770_v63 = vadd.f32 %v1203_v55, %v769_v62 }
 0x280   : > { %v1328_v13 = vpop.f32.mrf.mxu0 }
 0x281   : > { %1382 = vtanh.f32 %v770_v63 }
 0x282   : > { %1384 = vtanh.f32 %v775_v61  ;;  %v980_v14 = vpop.f32.mrf.mxu0 }
 0x284   : > { %v1331_v17 = vpop.f32.mrf.mxu0 }
 0x286   : > { %v990_v23 = vpop.f32.mrf.mxu0 }
 0x288   : > { %v1342_v29 = vpop.f32.mrf.mxu0 }
 0x28a   : > { %v1379_v0 = vpop.eup %1378  ;;  %v1069_v30 = vpop.f32.mrf.mxu0 }
 0x28b   : > { %v1381_v1 = vpop.eup %1380  ;;  %1312 = vmatprep.mubr.msk.f32.mxu1 %vm568_vm2, %v1379_v0 }
 0x28c   : > { %1313 = vmatmul.mubr.msk.f32.vlgmr.msra.gmra.mxu1 %vm568_vm2, %v1381_v1 }
 0x28d   : > { %1350 = vmatpush3.msra.mxu1 %v1002_v47 }
 0x28e   : > { %v1383_v2 = vpop.eup %1382  ;;  %1347 = vmatprep.subr.mxu1 %v1001_v51 }
 0x28f   : > { %v1385_v3 = vpop.eup %1384  ;;  %1315 = vmatprep.mubr.msk.f32.mxu1 %vm568_vm2, %v1383_v2  ;;  %1351 = vmatpush3.msra.mxu1 %v1001_v51 }
 0x290   : > { %1316 = vmatmul.mubr.msk.f32.gmra.mxu1 %vm568_vm2, %v1385_v3  ;;  %1348 = vmatprep.subr.mxu1 %v1000_v53 }
 0x291   : > { %1352 = vmatpush3.msra.mxu1 %v1000_v53  ;;  %1343 = vmatprep.mubr.msk.f32.mxu1 %vm568_vm2, %v896_v50 }
 0x292   : > { %1349 = vmatprep.subr.mxu1 %v999_v54 }
 0x293   : > { %1353 = vmatpush3.msra.mxu1 %v999_v54 }
 0x294   : > { %1344 = vmatmul.mubr.msk.f32.vlgmr.msra.gmra.mxu1 %vm568_vm2, %v897_v52 }
 0x34c   : > { %v1314_v5 = vpop.f32.mrf.mxu1 }
 0x34d   : > { %v877_v6 = vadd.f32 %v1314_v5, %v1208_v4 }
 0x34e   : > { %v871_v7 = vpop.f32.mrf.mxu1 }
 0x34f   : > { %v872_v8 = vadd.f32 %v1208_v4, %v871_v7  ;;  %1386 = vtanh.f32 %v877_v6 }
 0x350   : > { %v1317_v9 = vpop.f32.mrf.mxu1 }
 0x351   : > { %1388 = vtanh.f32 %v872_v8  ;;  %v887_v10 = vadd.f32 %v1317_v9, %v1208_v4 }
 0x352   : > { %v881_v11 = vpop.f32.mrf.mxu1 }
 0x353   : > { %v882_v12 = vadd.f32 %v1208_v4, %v881_v11  ;;  %1390 = vtanh.f32 %v887_v10 }
 0x354   : > { %v1345_v31 = vpop.f32.mrf.mxu1 }
 0x355   : > { %1392 = vtanh.f32 %v882_v12 }
 0x356   : > { %v1079_v34 = vpop.f32.mrf.mxu1 }
 0x35c   : > { %v1387_v15 = vpop.eup %1386 }
 0x35d   : > { %v1089_v20 = vmul.f32 %v1387_v15, %v1328_v13 }
 0x35e   : > { %v1389_v16 = vpop.eup %1388 }
 0x35f   : > { %v1088_v18 = vmul.f32 %v1389_v16, %v980_v14  ;;  %v1095_v26 = vsel %vm568_vm2, %v1089_v20, 0.0 }
 0x360   : > { %v1391_v19 = vpop.eup %1390 }
 0x361   : > { %v1092_v21 = vsel %vm568_vm2, %v1088_v18, 0.0  ;;  %v1091_v25 = vmul.f32 %v1391_v19, %v1331_v17 }
 0x362   : > { %v1393_v22 = vpop.eup %1392  ;;  %1093 = vadd.xlane.f32.xlu0 %v1092_v21 }
 0x363   : > { %v1090_v24 = vmul.f32 %v1393_v22, %v990_v23  ;;  %v1101_v28 = vsel %vm568_vm2, %v1091_v25, 0.0 }
 0x365   : > { %v1098_v27 = vsel %vm568_vm2, %v1090_v24, 0.0 }
 0x366   : > { %1096 = vadd.xlane.f32.xlu0 %v1095_v26  ;;  %1099 = vadd.xlane.f32.xlu1 %v1098_v27 }
 0x36a   : > { %1102 = vadd.xlane.f32.xlu1 %v1101_v28 }
 0x3eb   : > { %v1094_v32 = vpop.xlane.xlu0 %1093 }
 0x3ec   : > { %v1104_v33 = vadd.f32 %v1094_v32, %v1069_v30 }
 0x3ee   : > { %1109 = vst.msk [vmem:[%s437_s17] sm:$0xff] %vm1108_vm3, %v1104_v33 }
 0x3ef   : > { %v1097_v35 = vpop.xlane.xlu0 %1096  ;;  %v1100_v36 = vpop.xlane.xlu1 %1099 }
 0x3f0   : > { %v1105_v37 = vadd.f32 %v1342_v29, %v1097_v35  ;;  %v1106_v38 = vadd.f32 %v1100_v36, %v1079_v34 }
 0x3f2   : > { %1110 = vst.msk [vmem:[%s437_s17 + $0x8] sm:$0xff] %vm1108_vm3, %v1105_v37  ;;  %1111 = vst.msk [vmem:[%s437_s17 + $0x10] sm:$0xff] %vm1108_vm3, %v1106_v38 }
 0x3f3   : > { %v1103_v39 = vpop.xlane.xlu1 %1102 }
 0x3f4   : > { %v1107_v40 = vadd.f32 %v1345_v31, %v1103_v39 }
 0x3f6   : > { %1112 = vst.msk [vmem:[%s437_s17 + $0x18] sm:$0xff] %vm1108_vm3, %v1107_v40 }
 0x3f7 PF: > { %s22_s21 = sadd.s32 1, %s1400_s21  }
 0x3f8   : > { %p19_p4 = scmp.ge.s32.totalorder %s22_s21, 4  }
 0x3fa   :  { %21 = sbr.rel (!%p19_p4) target bundleno = 1 (0x1), region = 101 }

</bundles_post_ra>
